<compile_context>
chip_gen: v7x
topology: tpu7x:2x2x1
jax: 0.10.0
libtpu: 0.0.40
codegen_flags: <defaults>
</compile_context>

<pallas_src>
import jax
import jax.numpy as jnp
from jax.experimental import pallas as pl
from jax.experimental.pallas import tpu as pltpu


def _single_variance_kernel(var_ref, out_ref):
    # var_ref: (1, 1) f32 in VMEM holding the raw `variance` parameter.
    # out_ref: (block_rows, 128) f32 lane-dense output tile in VMEM.
    e = jnp.exp(var_ref[...] * 10.0)                      # (1, 1) vector exp
    out_ref[...] = jnp.broadcast_to(e, out_ref.shape)     # splat + dense stores


def _fill_exp10(n, scalar_param, block_rows_max=2048):
    """Return an (n, 1) float32 array filled with exp(10 * scalar_param[0])."""
    if n == 0:
        return jnp.zeros((0, 1), jnp.float32)

    lanes = 128
    sub = 8
    rows_total = pl.cdiv(n, lanes)

    # Keep block_rows a multiple of 8 so stores are unmasked full vregs.
    block_rows_max = max(sub, (block_rows_max // sub) * sub)

    if rows_total <= block_rows_max:
        # Single block covering the whole array; pad rows to a multiple of 8
        # for (8, 128)-aligned tiles (extra rows are sliced off below).
        block_rows = pl.cdiv(rows_total, sub) * sub
        padded_rows = block_rows
    else:
        block_rows = block_rows_max
        padded_rows = pl.cdiv(rows_total, block_rows) * block_rows

    grid = (padded_rows // block_rows,)

    var_2d = jnp.asarray(scalar_param, jnp.float32).reshape(1, 1)

    out = pl.pallas_call(
        _single_variance_kernel,
        out_shape=jax.ShapeDtypeStruct((padded_rows, lanes), jnp.float32),
        grid=grid,
        in_specs=[pl.BlockSpec((1, 1), lambda i: (0, 0))],
        out_specs=pl.BlockSpec((block_rows, lanes), lambda i: (i, 0)),
        compiler_params=pltpu.CompilerParams(
            dimension_semantics=("parallel",)),
    )(var_2d)

    # Every element holds the same value, so padded rows/lanes are simply
    # dropped by the slice; when n is a multiple of 128 and fits one block,
    # this is a pure bitcast.
    return out.reshape(-1)[:n].reshape(n, 1)


def single_variance_forward(x, variance, block_rows_max=2048):
    """Pallas equivalent of SingleVarianceNetwork.forward.

    x:        array whose leading dim is the batch size N (values unused,
              never DMA'd — only x.shape[0] is read on the host).
    variance: scalar parameter, shape (1,) float32.
    returns:  (N, 1) float32 filled with exp(variance * 10).
    """
    return _fill_exp10(x.shape[0], variance, block_rows_max)


def single_variance_get_secondvariance(x, second_variance, block_rows_max=2048):
    """Pallas equivalent of SingleVarianceNetwork.get_secondvariance."""
    return _fill_exp10(x.shape[0], second_variance, block_rows_max)


# TODO(synk): set_trainable / requires_grad are training-framework concerns
# with no Pallas equivalent; parameters are passed as plain arrays here.


if __name__ == "__main__":
    key = jax.random.PRNGKey(0)

    # Deterministic "parameters" (module __init__: both scalars = init_val).
    init_val = 0.3
    variance = jnp.array([init_val], dtype=jnp.float32)
    second_variance = jnp.array([init_val], dtype=jnp.float32)

    # Small example input; only len(x) matters for the forward pass.
    N, D = 16, 3
    x = jax.random.normal(key, (N, D), dtype=jnp.float32)

    out = jax.block_until_ready(single_variance_forward(x, variance))
    out2 = jax.block_until_ready(
        single_variance_get_secondvariance(x, second_variance))

    # Reference check against plain JAX (same semantics as PyTorch).
    ref = jnp.ones((N, 1), jnp.float32) * jnp.exp(variance * 10.0)
    assert out.shape == (N, 1) and out.dtype == jnp.float32
    assert jnp.allclose(out, ref, rtol=1e-6, atol=1e-6)
    assert jnp.allclose(out2, ref, rtol=1e-6, atol=1e-6)

    # Also exercise an N that is not a multiple of 128 and spans multiple
    # grid blocks (forces the tiled + padded path).
    N_big = 3000
    x_big = jnp.zeros((N_big, D), jnp.float32)
    out_big = jax.block_until_ready(
        single_variance_forward(x_big, variance, block_rows_max=8))
    ref_big = jnp.full((N_big, 1), jnp.exp(init_val * 10.0), jnp.float32)
    assert out_big.shape == (N_big, 1)
    assert jnp.allclose(out_big, ref_big, rtol=1e-6, atol=1e-6)

    print("KERNEL_OK")
</pallas_src>

<mosaic_0001>
module attributes {stable_mosaic.version = 11 : i64} {
  func.func @_single_variance_kernel(%arg0: i32, %arg1: memref<1x1xf32, #tpu.memory_space<vmem>>, %arg2: memref<8x128xf32, #tpu.memory_space<vmem>>) attributes {dimension_semantics = [#tpu.dimension_semantics<parallel>], iteration_bounds = array<i64: 1>, scalar_prefetch = 0 : i64, scratch_operands = 0 : i64, tpu.core_type = #tpu.core_type<tc>, window_params = [{pipeline_mode = #tpu.pipeline_mode<synchronous>, transform_indices = @transform_0, window_bounds = array<i64: 1, 1>}, {transform_indices = @transform_1, window_bounds = array<i64: 8, 128>}]} {
    %c0 = arith.constant 0 : index
    %c0_0 = arith.constant 0 : index
    %0 = vector.load %arg1[%c0, %c0_0] : memref<1x1xf32, #tpu.memory_space<vmem>>, vector<1x1xf32>
    %cst = arith.constant 1.000000e+01 : f32
    %1 = vector.broadcast %cst : f32 to vector<1x1xf32>
    %2 = arith.mulf %0, %1 : vector<1x1xf32>
    %3 = math.exp %2 : vector<1x1xf32>
    %4 = vector.shape_cast %3 : vector<1x1xf32> to vector<1x1xf32>
    %5 = vector.broadcast %4 : vector<1x1xf32> to vector<8x128xf32>
    %c0_1 = arith.constant 0 : index
    %c0_2 = arith.constant 0 : index
    %6 = vector.load %arg2[%c0_1, %c0_2] : memref<8x128xf32, #tpu.memory_space<vmem>>, vector<8x128xf32>
    tpu.vector_store %arg2[%c0_1, %c0_2], %5 {strides = array<i32>} : memref<8x128xf32, #tpu.memory_space<vmem>>, vector<8x128xf32>,
    return
  }
  func.func @transform_0(%arg0: i32) -> (i32, i32) {
    %c0_i32 = arith.constant 0 : i32
    %c0_i32_0 = arith.constant 0 : i32
    %c0_i32_1 = arith.constant 0 : i32
    return %c0_i32, %c0_i32_0 : i32, i32
  }
  func.func @transform_1(%arg0: i32) -> (i32, i32) {
    %c0_i32 = arith.constant 0 : i32
    %c0_i32_0 = arith.constant 0 : i32
    return %arg0, %c0_i32 : i32, i32
  }
}

</mosaic_0001>

<bundles_post_ra>
// kernel: tpu_custom_call.1
= control target key start
LH: loop header
LB: loop body
LE: loop exit
PB: predicated region body
PF: predicated region fallthrough
CT: control target
= control target key end

     0   :  { %s95_s0 = inlined_call_operand.<no memory space> [shape: f32[1,1], index: 0, kind: input, shape index: {}]   ;;  %s96_s1 = inlined_call_operand.hbm [shape: f32[8,128], index: 1, kind: output, shape index: {}]  }
   0x1   :  { %v6_v0 = vstv %s95_s0 }
   0x2   :  { %7 = vst [vmem:[#allocation2] sm:$0x1] %v6_v0 }
   0x9   :  { %v11_v1 = vld [vmem:[#allocation2] sm:$0x1] }
   0xa   :  { %8 = vsyncpa [#allocation4], 0  ;;  %v68_v2 = vmov 0   ;;  %v12_v3 = vmul.f32 10.0, %v11_v1  ;;  %v16_v5 = vlaneseq  ;;  %s69_s8 = smov [#allocation3]  }
   0xb   :  { %41 = vset.pattern.permute.xlu0 %v68_v2  ;;  %s31_s9 = sshll.u32 %s69_s8, 4  ;;  %s32_s9 = int_to_ptr.vmem [resolvable:$true] %s31_s9 }
   0xc   :  { %v13_v4 = vmul.f32 1.442695, %v12_v3  ;;  %v17_v6 = vshrl.u32 %v16_v5, 7  ;;  %s44_s0 = scalar_lea.vmem %s32_s9, 128  ;;  %p49_p1 = scmp.lt.s32.totalorder %s32_s9, %s32_s9 }
   0xd   :  { %p45_p0 = scmp.ne.s32.totalorder %s32_s9, %s44_s0  ;;  %p50_p2 = scmp.lt.s32.totalorder %s44_s0, %s44_s0 }
   0xe   :  { %42 = vpow2.f32 %v13_v4  ;;  %v18_v7 = vsub.s32 0, %v17_v6 }
   0xf   :  { %p51_p3 = por %p50_p2, %p49_p1 }
  0x11   :  { %p52_p4 = pnand %p51_p3, %p45_p0 }
  0x18   :  { %v43_v8 = vpop.eup %42 }
  0x19   :  { %v19_v9 = vrot.slane %v43_v8, %v18_v7 }
  0x1b   :  { %21 = vperm.xlu0 %41, %v19_v9  }
  0x9a   :  { %v22_v10 = vpop.permute.xlu0 %21 }
  0x9b   :  { %24 = vst [vmem:[#allocation3] sm:$0xff] %v22_v10 }
  0x9c   :  { %55 = shalt.err (!%p52_p4)
}
  0x9d   :  { %s56_s12 = scalar_lea.hbm %s96_s1, 128 }
  0x9e   :  { %p57_p5 = scmp.ne.s32.totalorder %s96_s1, %s56_s12  ;;  %p60_p6 = scmp.lt.u32.totalorder %s56_s12, %s96_s1 }
  0xa0   :  { %p62_p7 = pnand %p60_p6, %p57_p5 }
  0xa2   :  { %65 = shalt.err (!%p62_p7)
}
  0xa3   :  { %34 = dma.vmem_to_hbm [thread:$0]  %s32_s9, 128, %s96_s1, [#allocation4]  }
  0xa4   :  { %66 = dma.done.wait [#allocation4], 128  }
  0xa5   :  { %67 = vsyncadd [#allocation4], 4294967168 }
  0xa6   :  { %38 = vsyncpa [#allocation4], 1 }

</bundles_post_ra>
